<compile_context>
chip_gen: v7x
topology: tpu7x:2x2x1
jax: 0.10.0
libtpu: 0.0.40
codegen_flags: <defaults>
</compile_context>

<pallas_src>
import functools

import jax
import jax.numpy as jnp
from jax.experimental import pallas as pl
from jax.experimental.pallas import tpu as pltpu

LANE = 128                      # TPU lane width; last-dim tiles must be multiples of this
SUBLANE = 8                     # f32 sublane height; second-to-last dim alignment
VMEM_BUDGET = 56 * 2**20        # keep per-step footprint under v7x's 64 MiB VMEM


def _round_up(x, m):
    return ((x + m - 1) // m) * m


def basic_block_kernel(x_ref, w1_ref, w2_ref, o_ref):
    # Fused hot path, all operands already in VMEM:
    #   MXU matmul (f32 accumulate) -> VPU ReLU -> MXU matmul -> lane-dense store.
    h = jnp.dot(x_ref[...], w1_ref[...], preferred_element_type=jnp.float32)
    h = jnp.maximum(h, 0.0)
    out = jnp.dot(h.astype(w2_ref.dtype), w2_ref[...],
                  preferred_element_type=jnp.float32)
    o_ref[...] = out.astype(o_ref.dtype)


def prepare_weights(w1, w2, *, compute_dtype=None):
    """One-time weight preprocessing, hoisted out of the per-call path.

    w1: (out_dim, in_dim), w2: (out_dim, out_dim)  -- PyTorch nn.Linear layout.
    Returns pre-transposed, lane-padded weights:
        w1t_p: (in_p, out_p), w2t_p: (out_p, out_p)  with in_p/out_p multiples of 128.
    Pass compute_dtype=jnp.bfloat16 to run the matmuls on the bf16 MXU path
    (accumulation stays f32 inside the kernel).
    """
    out_dim, in_dim = w1.shape
    assert w2.shape == (out_dim, out_dim)
    in_p = _round_up(in_dim, LANE)
    out_p = _round_up(out_dim, LANE)
    dt = w1.dtype if compute_dtype is None else compute_dtype
    w1t_p = jnp.zeros((in_p, out_p), dt).at[:in_dim, :out_dim].set(w1.T.astype(dt))
    w2t_p = jnp.zeros((out_p, out_p), dt).at[:out_dim, :out_dim].set(w2.T.astype(dt))
    return w1t_p, w2t_p


@functools.partial(jax.jit, static_argnames=("out_dim", "tile_m"))
def basic_block_forward(x, w1t_p, w2t_p, *, out_dim, tile_m=256):
    """x: (B, in_dim); w1t_p/w2t_p from prepare_weights(). Returns (B, out_dim)."""
    B, in_dim = x.shape
    in_p, out_p = w1t_p.shape
    assert w2t_p.shape == (out_p, out_p)
    compute_dtype = w1t_p.dtype
    itemsize = jnp.dtype(compute_dtype).itemsize
    out_itemsize = jnp.dtype(x.dtype).itemsize

    # M tile: 8-sublane aligned, no larger than the (8-aligned) batch, aiming for
    # tile_m rows on large batches.  Small batches stay small (no 128-row blow-up).
    b_aligned = _round_up(B, SUBLANE)
    tm = min(_round_up(tile_m, SUBLANE), b_aligned)

    # Per-grid-step VMEM footprint: x tile (double-buffered) + out tile (double-buffered)
    # + f32 intermediate h + resident single-buffered weights.
    def footprint(m):
        return (2 * m * in_p * itemsize
                + 2 * m * out_p * out_itemsize
                + m * out_p * 4
                + (in_p * out_p + out_p * out_p) * itemsize)

    while tm > SUBLANE and footprint(tm) > VMEM_BUDGET:
        tm = max(SUBLANE, _round_up(tm // 2, SUBLANE))
    # NOTE: this design keeps both full (padded) weight matrices resident in VMEM.
    # TODO(synk): for weights too large to stay resident (> ~50 MiB), add K/N grid axes
    # with an f32 accumulator scratch (pl.when(k==0) init, "arbitrary" K axis).

    n_tiles = pl.cdiv(B, tm)
    B_pad = n_tiles * tm
    grid = (n_tiles,)   # parallel axis -> shards across v7x's two TensorCores when >1

    # Zero-pad batch and feature dims; padded rows/cols contribute zeros, sliced off below.
    if B_pad == B and in_p == in_dim and x.dtype == compute_dtype:
        x_p = x
    else:
        x_p = jnp.zeros((B_pad, in_p), compute_dtype).at[:B, :in_dim].set(
            x.astype(compute_dtype))

    vmem_limit = int(min(max(2 * footprint(tm), 32 * 2**20), 64 * 2**20))

    out_padded = pl.pallas_call(
        basic_block_kernel,
        out_shape=jax.ShapeDtypeStruct((B_pad, out_p), x.dtype),
        grid_spec=pltpu.PrefetchScalarGridSpec(
            num_scalar_prefetch=0,
            grid=grid,
            in_specs=[
                # x row-tile, streamed (default double-buffered).
                pl.BlockSpec((tm, in_p), lambda i: (i, 0)),
                # Weights: constant index_map -> resident; single-buffer to save VMEM.
                pl.BlockSpec((in_p, out_p), lambda i: (0, 0),
                             pipeline_mode=pl.Buffered(1)),
                pl.BlockSpec((out_p, out_p), lambda i: (0, 0),
                             pipeline_mode=pl.Buffered(1)),
            ],
            out_specs=pl.BlockSpec((tm, out_p), lambda i: (i, 0)),
        ),
        compiler_params=pltpu.CompilerParams(
            dimension_semantics=("parallel",),
            vmem_limit_bytes=vmem_limit,
        ),
    )(x_p, w1t_p, w2t_p)

    return out_padded[:B, :out_dim]


if __name__ == "__main__":
    key = jax.random.PRNGKey(0)
    k_x, k_w1, k_w2 = jax.random.split(key, 3)

    batch, in_dim, out_dim = 16, 32, 64

    # Deterministic parameter init (Kaiming-uniform-like bounds, matching nn.Linear scale).
    bound1 = 1.0 / (in_dim ** 0.5)
    bound2 = 1.0 / (out_dim ** 0.5)
    w1 = jax.random.uniform(k_w1, (out_dim, in_dim), jnp.float32, -bound1, bound1)
    w2 = jax.random.uniform(k_w2, (out_dim, out_dim), jnp.float32, -bound2, bound2)
    x = jax.random.normal(k_x, (batch, in_dim), jnp.float32)

    # One-time weight prep (transpose + pad), hoisted out of the forward path.
    w1t_p, w2t_p = prepare_weights(w1, w2)

    out = basic_block_forward(x, w1t_p, w2t_p, out_dim=out_dim)
    out = jax.block_until_ready(out)

    # Pure-JAX reference.
    ref = jnp.maximum(x @ w1.T, 0.0) @ w2.T
    assert out.shape == (batch, out_dim)
    assert jnp.allclose(out, ref, atol=1e-5, rtol=1e-5), "mismatch vs reference"

    print("KERNEL_OK")
</pallas_src>

<mosaic_0001>
module attributes {stable_mosaic.version = 11 : i64} {
  func.func @basic_block_kernel(%arg0: i32, %arg1: memref<16x128xf32, #tpu.memory_space<vmem>>, %arg2: memref<128x128xf32, #tpu.memory_space<vmem>>, %arg3: memref<128x128xf32, #tpu.memory_space<vmem>>, %arg4: memref<16x128xf32, #tpu.memory_space<vmem>>) attributes {dimension_semantics = [#tpu.dimension_semantics<parallel>], iteration_bounds = array<i64: 1>, scalar_prefetch = 0 : i64, scratch_operands = 0 : i64, tpu.core_type = #tpu.core_type<tc>, window_params = [{transform_indices = @transform_0, window_bounds = array<i64: 16, 128>}, {pipeline_mode = #tpu.pipeline_mode<synchronous>, transform_indices = @transform_1, window_bounds = array<i64: 128, 128>}, {pipeline_mode = #tpu.pipeline_mode<synchronous>, transform_indices = @transform_2, window_bounds = array<i64: 128, 128>}, {transform_indices = @transform_3, window_bounds = array<i64: 16, 128>}]} {
    %c0 = arith.constant 0 : index
    %c0_0 = arith.constant 0 : index
    %0 = vector.load %arg1[%c0, %c0_0] : memref<16x128xf32, #tpu.memory_space<vmem>>, vector<16x128xf32>
    %c0_1 = arith.constant 0 : index
    %c0_2 = arith.constant 0 : index
    %1 = vector.load %arg2[%c0_1, %c0_2] : memref<128x128xf32, #tpu.memory_space<vmem>>, vector<128x128xf32>
    %cst = arith.constant dense<0.000000e+00> : vector<16x128xf32>
    %2 = tpu.matmul %0, %1, %cst {dimension_numbers = #tpu.dot_dimension_numbers<[1], [0], [0], [1], [0, 0, 1, 1], [], []>} : vector<16x128xf32>, vector<128x128xf32>, vector<16x128xf32> -> vector<16x128xf32>
    %cst_3 = arith.constant 0.000000e+00 : f32
    %3 = vector.broadcast %cst_3 : f32 to vector<16x128xf32>
    %4 = arith.maximumf %2, %3 : vector<16x128xf32>
    %c0_4 = arith.constant 0 : index
    %c0_5 = arith.constant 0 : index
    %5 = vector.load %arg3[%c0_4, %c0_5] : memref<128x128xf32, #tpu.memory_space<vmem>>, vector<128x128xf32>
    %cst_6 = arith.constant dense<0.000000e+00> : vector<16x128xf32>
    %6 = tpu.matmul %4, %5, %cst_6 {dimension_numbers = #tpu.dot_dimension_numbers<[1], [0], [0], [1], [0, 0, 1, 1], [], []>} : vector<16x128xf32>, vector<128x128xf32>, vector<16x128xf32> -> vector<16x128xf32>
    %c0_7 = arith.constant 0 : index
    %c0_8 = arith.constant 0 : index
    %7 = vector.load %arg4[%c0_7, %c0_8] : memref<16x128xf32, #tpu.memory_space<vmem>>, vector<16x128xf32>
    tpu.vector_store %arg4[%c0_7, %c0_8], %6 {strides = array<i32>} : memref<16x128xf32, #tpu.memory_space<vmem>>, vector<16x128xf32>,
    return
  }
  func.func @transform_0(%arg0: i32) -> (i32, i32) {
    %c0_i32 = arith.constant 0 : i32
    %c0_i32_0 = arith.constant 0 : i32
    return %arg0, %c0_i32 : i32, i32
  }
  func.func @transform_1(%arg0: i32) -> (i32, i32) {
    %c0_i32 = arith.constant 0 : i32
    %c0_i32_0 = arith.constant 0 : i32
    %c0_i32_1 = arith.constant 0 : i32
    return %c0_i32, %c0_i32_0 : i32, i32
  }
  func.func @transform_2(%arg0: i32) -> (i32, i32) {
    %c0_i32 = arith.constant 0 : i32
    %c0_i32_0 = arith.constant 0 : i32
    %c0_i32_1 = arith.constant 0 : i32
    return %c0_i32, %c0_i32_0 : i32, i32
  }
  func.func @transform_3(%arg0: i32) -> (i32, i32) {
    %c0_i32 = arith.constant 0 : i32
    %c0_i32_0 = arith.constant 0 : i32
    return %arg0, %c0_i32 : i32, i32
  }
}

</mosaic_0001>

<bundles_post_ra>
// kernel: basic_block_forward.1
= control target key start
LH: loop header
LB: loop body
LE: loop exit
PB: predicated region body
PF: predicated region fallthrough
CT: control target
= control target key end

     0   :  { %8 = vsyncpa [#allocation3], 0  ;;  %s572_s0 = inlined_call_operand.vmem [shape: f32[16,128], index: 0, kind: input, shape index: {}]   ;;  %s573_s1 = inlined_call_operand.hbm [shape: f32[128,128], index: 1, kind: input, shape index: {}]   ;;  %s574_s2 = inlined_call_operand.hbm [shape: f32[128,128], index: 2, kind: input, shape index: {}]   ;;  %s575_s3 = inlined_call_operand.hbm [shape: f32[16,128], index: 3, kind: output, shape index: {}]  }
   0x1   :  { %9 = vsyncpa [#allocation6], 0 }
   0x2   :  { %10 = vsyncpa [#allocation4], 0  ;;  %s496_s12 = smov [#allocation2]   ;;  %s424_s16 = scalar_lea.hbm %s573_s1, 2048 }
   0x3   :  { %s18_s13 = sshll.u32 %s496_s12, 4  ;;  %p425_p0 = scmp.ne.s32.totalorder %s573_s1, %s424_s16  ;;  %s19_s13 = int_to_ptr.vmem [resolvable:$true] %s18_s13 }
   0x4   :  { %p428_p1 = scmp.lt.u32.totalorder %s424_s16, %s573_s1 }
   0x6   :  { %p430_p2 = pnand %p428_p1, %p425_p0 }
   0x8   :  { %433 = shalt.err (!%p430_p2)
}
   0x9   :  { %s434_s21 = scalar_lea.vmem %s19_s13, 2048  ;;  %p439_p4 = scmp.lt.s32.totalorder %s19_s13, %s19_s13 }
   0xa   :  { %p435_p3 = scmp.ne.s32.totalorder %s19_s13, %s434_s21  ;;  %p440_p5 = scmp.lt.s32.totalorder %s434_s21, %s434_s21 }
   0xc   :  { %p441_p6 = por %p440_p5, %p439_p4 }
   0xe   :  { %p442_p7 = pnand %p441_p6, %p435_p3 }
  0x10   :  { %445 = shalt.err (!%p442_p7)
}
  0x11   :  { %s497_s22 = smov 128   ;;  %s498_s23 = smov 8  }
  0x12   :  { %24 = dma.hbm_to_vmem [thread:$0]  %s573_s1, 2048, %s19_s13, [#allocation3], %s497_s22, %s497_s22, %s498_s23  }
  0x13   :  { %s499_s26 = smov [#allocation5]   ;;  %s446_s30 = scalar_lea.hbm %s574_s2, 2048 }
  0x14   :  { %s30_s27 = sshll.u32 %s499_s26, 4  ;;  %p447_p8 = scmp.ne.s32.totalorder %s574_s2, %s446_s30  ;;  %s31_s27 = int_to_ptr.vmem [resolvable:$true] %s30_s27 }
  0x15   :  { %p450_p9 = scmp.lt.u32.totalorder %s446_s30, %s574_s2 }
  0x17   :  { %p452_p10 = pnand %p450_p9, %p447_p8 }
  0x19   :  { %455 = shalt.err (!%p452_p10)
}
  0x1a   :  { %s456_s8 = scalar_lea.vmem %s31_s27, 2048  ;;  %p461_p12 = scmp.lt.s32.totalorder %s31_s27, %s31_s27 }
  0x1b   :  { %p457_p11 = scmp.ne.s32.totalorder %s31_s27, %s456_s8  ;;  %p462_p13 = scmp.lt.s32.totalorder %s456_s8, %s456_s8 }
  0x1d   :  { %p463_p0 = por %p462_p13, %p461_p12 }
  0x1f   :  { %p464_p1 = pnand %p463_p0, %p457_p11 }
  0x21   :  { %467 = shalt.err (!%p464_p1)
}
  0x22   :  { %36 = dma.hbm_to_vmem [thread:$0]  %s574_s2, 2048, %s31_s27, [#allocation6], %s497_s22, %s497_s22, %s498_s23  }
  0x23   :  { %490 = dma.done.wait [#allocation3], 2048  }
  0x24   :  { %491 = vsyncadd [#allocation3], 4294965248 }
  0x25   :  { %492 = dma.done.wait [#allocation6], 2048  }
  0x26   :  { %493 = vsyncadd [#allocation6], 4294965248  ;;  %v45_v0 = vld [vmem:[#allocation2] sm:$0xff]  ;;  %v46_v1 = vld [vmem:[#allocation2 + $0x8] sm:$0xff]  ;;  %s500_s13 = smov [#allocation7]  }
  0x27   :  { %v47_v2 = vld [vmem:[#allocation2 + $0x10] sm:$0xff]  ;;  %v355_v3 = vpack.c.bf16 %v46_v1, %v45_v0  ;;  %v48_v4 = vld [vmem:[#allocation2 + $0x18] sm:$0xff]  ;;  %v49_v6 = vld [vmem:[#allocation2 + $0x20] sm:$0xff]  ;;  %s236_s14 = sshll.u32 %s500_s13, 4  ;;  %s237_s14 = int_to_ptr.vmem [resolvable:$true] %s236_s14 }
  0x28   :  { %v359_v5 = vpack.c.bf16 %v48_v4, %v47_v2  ;;  %v50_v7 = vld [vmem:[#allocation2 + $0x28] sm:$0xff]  ;;  %v51_v9 = vld [vmem:[#allocation2 + $0x30] sm:$0xff]  ;;  %v52_v10 = vld [vmem:[#allocation2 + $0x38] sm:$0xff]  ;;  %p473_p3 = scmp.lt.s32.totalorder %s237_s14, %s237_s14 }
  0x29   :  { %356 = vmatprep.subr.bf16.mxu0 %v355_v3  ;;  %v363_v8 = vpack.c.bf16 %v50_v7, %v49_v6  ;;  %v43_v11 = vld [vmem:[%s572_s0] sm:$0xff]  ;;  %v139_v13 = vld [vmem:[#allocation5 + $0x8] sm:$0xff]  ;;  %v140_v14 = vld [vmem:[#allocation5 + $0x10] sm:$0xff]  ;;  %v367_v20 = vpack.c.bf16 %v52_v10, %v51_v9 }
  0x2a   :  { %358 = vmatpush3.bf16.msra.mxu0 %v355_v3  ;;  %317 = vmatprep.mubr.f32.mxu0 %v43_v11  ;;  %v138_v12 = vld [vmem:[#allocation5] sm:$0xff]  ;;  %v141_v16 = vld [vmem:[#allocation5 + $0x18] sm:$0xff]  ;;  %v143_v19 = vld [vmem:[#allocation5 + $0x28] sm:$0xff] }
  0x2b   :  { %360 = vmatprep.subr.bf16.mxu0 %v359_v5  ;;  %v387_v15 = vpack.c.bf16 %v139_v13, %v138_v12  ;;  %v391_v17 = vpack.c.bf16 %v141_v16, %v140_v14  ;;  %v142_v18 = vld [vmem:[#allocation5 + $0x20] sm:$0xff]  ;;  %v54_v22 = vld [vmem:[#allocation2 + $0x48] sm:$0xff]  ;;  %v144_v24 = vld [vmem:[#allocation5 + $0x30] sm:$0xff] }
  0x2c   :  { %v53_v21 = vld [vmem:[#allocation2 + $0x40] sm:$0xff]  ;;  %v395_v23 = vpack.c.bf16 %v143_v19, %v142_v18  ;;  %v145_v25 = vld [vmem:[#allocation5 + $0x38] sm:$0xff]  ;;  %v55_v27 = vld [vmem:[#allocation2 + $0x50] sm:$0xff] }
  0x2d   :  { %388 = vmatprep.subr.bf16.mxu1 %v387_v15  ;;  %v371_v26 = vpack.c.bf16 %v54_v22, %v53_v21  ;;  %v56_v28 = vld [vmem:[#allocation2 + $0x58] sm:$0xff]  ;;  %v399_v29 = vpack.c.bf16 %v145_v25, %v144_v24  ;;  %v146_v30 = vld [vmem:[#allocation5 + $0x40] sm:$0xff]  ;;  %v147_v31 = vld [vmem:[#allocation5 + $0x48] sm:$0xff] }
  0x2e   :  { %362 = vmatpush3.bf16.msra.mxu0 %v359_v5  ;;  %390 = vmatpush3.bf16.msra.mxu1 %v387_v15  ;;  %v375_v32 = vpack.c.bf16 %v56_v28, %v55_v27  ;;  %v57_v33 = vld [vmem:[#allocation2 + $0x60] sm:$0xff]  ;;  %v58_v34 = vld [vmem:[#allocation2 + $0x68] sm:$0xff]  ;;  %v403_v35 = vpack.c.bf16 %v147_v31, %v146_v30  ;;  %v148_v36 = vld [vmem:[#allocation5 + $0x50] sm:$0xff] }
  0x2f   :  { %364 = vmatprep.subr.bf16.mxu0 %v363_v8  ;;  %392 = vmatprep.subr.bf16.mxu1 %v391_v17  ;;  %v149_v37 = vld [vmem:[#allocation5 + $0x58] sm:$0xff]  ;;  %v379_v38 = vpack.c.bf16 %v58_v34, %v57_v33  ;;  %v59_v39 = vld [vmem:[#allocation2 + $0x70] sm:$0xff]  ;;  %v150_v42 = vld [vmem:[#allocation5 + $0x60] sm:$0xff] }
  0x30   :  { %v60_v40 = vld [vmem:[#allocation2 + $0x78] sm:$0xff]  ;;  %v407_v41 = vpack.c.bf16 %v149_v37, %v148_v36  ;;  %v151_v43 = vld [vmem:[#allocation5 + $0x68] sm:$0xff]  ;;  %v152_v47 = vld [vmem:[#allocation5 + $0x70] sm:$0xff] }
  0x31   :  { %v383_v44 = vpack.c.bf16 %v60_v40, %v59_v39  ;;  %v411_v45 = vpack.c.bf16 %v151_v43, %v150_v42  ;;  %v44_v46 = vld [vmem:[%s572_s0 + $0x8] sm:$0xff]  ;;  %v153_v48 = vld [vmem:[#allocation5 + $0x78] sm:$0xff]  ;;  %s468_s0 = scalar_lea.vmem %s237_s14, 256 }
  0x32   :  { %366 = vmatpush3.bf16.msra.mxu0 %v363_v8  ;;  %394 = vmatpush3.bf16.msra.mxu1 %v391_v17  ;;  %v415_v49 = vpack.c.bf16 %v153_v48, %v152_v47  ;;  %p469_p2 = scmp.ne.s32.totalorder %s237_s14, %s468_s0  ;;  %p474_p4 = scmp.lt.s32.totalorder %s468_s0, %s468_s0 }
  0x33   :  { %368 = vmatprep.subr.bf16.mxu0 %v367_v20  ;;  %396 = vmatprep.subr.bf16.mxu1 %v395_v23 }
  0x34   :  { %p475_p5 = por %p474_p4, %p473_p3 }
  0x36   :  { %370 = vmatpush3.bf16.msra.mxu0 %v367_v20  ;;  %398 = vmatpush3.bf16.msra.mxu1 %v395_v23  ;;  %p476_p6 = pnand %p475_p5, %p469_p2 }
  0x37   :  { %372 = vmatprep.subr.bf16.mxu0 %v371_v26  ;;  %400 = vmatprep.subr.bf16.mxu1 %v399_v29 }
  0x3a   :  { %374 = vmatpush3.bf16.msra.mxu0 %v371_v26  ;;  %402 = vmatpush3.bf16.msra.mxu1 %v399_v29 }
  0x3b   :  { %376 = vmatprep.subr.bf16.mxu0 %v375_v32  ;;  %404 = vmatprep.subr.bf16.mxu1 %v403_v35 }
  0x3e   :  { %378 = vmatpush3.bf16.msra.mxu0 %v375_v32  ;;  %406 = vmatpush3.bf16.msra.mxu1 %v403_v35 }
  0x3f   :  { %380 = vmatprep.subr.bf16.mxu0 %v379_v38  ;;  %408 = vmatprep.subr.bf16.mxu1 %v407_v41 }
  0x42   :  { %382 = vmatpush3.bf16.msra.mxu0 %v379_v38  ;;  %410 = vmatpush3.bf16.msra.mxu1 %v407_v41 }
  0x43   :  { %384 = vmatprep.subr.bf16.mxu0 %v383_v44  ;;  %412 = vmatprep.subr.bf16.mxu1 %v411_v45 }
  0x46   :  { %386 = vmatpush3.bf16.msra.mxu0 %v383_v44  ;;  %414 = vmatpush3.bf16.msra.mxu1 %v411_v45 }
  0x47   :  { %416 = vmatprep.subr.bf16.mxu1 %v415_v49 }
  0x49   :  { %318 = vmatmul.mubr.f32.vlgmr.msra.gmra.mrb[0].mxu0 %v44_v46 }
  0x4a   :  { %418 = vmatpush3.bf16.msra.mxu1 %v415_v49 }
 0x11c   :  { %v319_v50 = vpop.f32.mrb[0].mxu0 }
 0x11d   :  { %v127_v51 = vpop.f32.mrb[1].mxu0  ;;  %v137_v53 = vmax.f32 %v319_v50, 0.0 }
 0x11e   :  { %v136_v52 = vmax.f32 %v127_v51, 0.0 }
 0x120   :  { %352 = vmatprep.mubr.f32.mxu1 %v136_v52 }
 0x121   :  { %353 = vmatmul.mubr.f32.vlgmr.msra.gmra.mrb[0].mxu1 %v137_v53 }
 0x1f4   :  { %v354_v54 = vpop.f32.mrb[0].mxu1 }
 0x1f5   :  { %230 = vst [vmem:[#allocation7 + $0x8] sm:$0xff] %v354_v54  ;;  %v220_v55 = vpop.f32.mrb[1].mxu1 }
 0x1f6   :  { %229 = vst [vmem:[#allocation7] sm:$0xff] %v220_v55 }
 0x1f7   :  { %479 = shalt.err (!%p476_p6)
}
 0x1f8   :  { %s480_s17 = scalar_lea.hbm %s575_s3, 256 }
 0x1f9   :  { %p481_p7 = scmp.ne.s32.totalorder %s575_s3, %s480_s17  ;;  %p484_p8 = scmp.lt.u32.totalorder %s480_s17, %s575_s3 }
 0x1fb   :  { %p486_p9 = pnand %p484_p8, %p481_p7 }
 0x1fd   :  { %489 = shalt.err (!%p486_p9)
}
 0x1fe   :  { %242 = dma.vmem_to_hbm [thread:$0]  %s237_s14, 256, %s575_s3, [#allocation4], %s497_s22, %s497_s22, %s498_s23  }
 0x1ff   :  { %494 = dma.done.wait [#allocation4], 256  }
 0x200   :  { %495 = vsyncadd [#allocation4], 4294967040 }
 0x201   :  { %246 = vsyncpa [#allocation3], 1 }
 0x202   :  { %247 = vsyncpa [#allocation6], 1 }
 0x203   :  { %248 = vsyncpa [#allocation4], 1 }

</bundles_post_ra>
